<compile_context>
chip_gen: v5e
topology: v5e:2x2
jax: 0.10.0
libtpu: 0.0.40
codegen_flags: <defaults>
</compile_context>

<pallas_src>
import functools

import jax
import jax.numpy as jnp
from jax import lax
from jax.experimental import pallas as pl
from jax.experimental.pallas import tpu as pltpu

MARGIN = 0.2


def _triplet_kernel(lab_sref, emb_ref, labc_ref, labr_ref, out_ref,
                    xn_scr, sqr_scr, sqc_scr, sum_scr, cnt_scr,
                    *, margin, ta, n_real):
    f32 = jnp.float32
    npad, dfeat = emb_ref.shape
    step = pl.program_id(0)

    # ---- step 0: L2-normalize once (eps = 1e-12, rsqrt -> EUP), cache in VMEM ----
    @pl.when(step == 0)
    def _init():
        x = emb_ref[...].astype(f32)
        ss = jnp.sum(x * x, axis=1, keepdims=True)                    # (npad, 1)
        xn = x * lax.rsqrt(jnp.maximum(ss, 1e-24))                    # == x / max(||x||, 1e-12)
        xn_scr[...] = xn
        xn2 = xn * xn
        sqc_scr[...] = jnp.sum(xn2, axis=1, keepdims=True)            # ||xn_i||^2 column form
        # (1, npad) row form via a skinny MXU matmul (no in-kernel transpose)
        sqr_scr[...] = lax.dot_general(jnp.ones((1, dfeat), f32), xn2,
                                       (((1,), (1,)), ((), ())),
                                       preferred_element_type=f32)
        sum_scr[...] = jnp.zeros_like(sum_scr)
        cnt_scr[...] = jnp.zeros_like(cnt_scr)

    a0 = pl.multiple_of(step * ta, ta)
    xn = xn_scr[...]                                                  # (npad, d)
    xa = xn_scr[pl.ds(a0, ta), :]                                     # (ta, d) anchor tile
    sq_col = sqc_scr[...]                                             # (npad, 1)
    sq_row = sqr_scr[...]                                             # (1, npad)
    sqa_col = sqc_scr[pl.ds(a0, ta), :]                               # (ta, 1)
    sqa_row = lax.dot_general(jnp.ones((1, dfeat), f32), xa * xa,
                              (((1,), (1,)), ((), ())),
                              preferred_element_type=f32)             # (1, ta)

    # Anchor-vs-all Gram in both orientations -> both distance-slab layouts.
    g = lax.dot_general(xa, xn, (((1,), (1,)), ((), ())),
                        preferred_element_type=f32)                   # (ta, npad)
    gt = lax.dot_general(xn, xa, (((1,), (1,)), ((), ())),
                         preferred_element_type=f32)                  # (npad, ta)
    d_row = jnp.sqrt(jnp.maximum(sqa_col + sq_row - 2.0 * g, 0.0))    # d[a, n] as rows
    d_col = jnp.sqrt(jnp.maximum(sq_col + sqa_row - 2.0 * gt, 0.0))   # d[a, p] as columns

    labc = labc_ref[...]                                              # (npad, 1) int32
    labr = labr_ref[...]                                              # (1, npad) int32
    sub_idx = lax.broadcasted_iota(jnp.int32, (npad, 1), 0)
    lane_idx = lax.broadcasted_iota(jnp.int32, (1, npad), 1)
    sub_valid = sub_idx < n_real                                      # mask padded p rows
    lane_valid = lane_idx < n_real                                    # mask padded n cols

    s_part = jnp.zeros((1, npad), f32)
    c_part = jnp.zeros((1, npad), f32)
    for t in range(ta):  # static unroll: ta is a small compile-time constant
        a_glob = a0 + t
        lab_a = lab_sref[a_glob]                                      # scalar read (SMEM)
        anchor_ok = a_glob < n_real
        pmask = (labc == lab_a) & (sub_idx != a_glob) & sub_valid & anchor_ok  # (npad, 1)
        nmask = (labr != lab_a) & lane_valid                                    # (1, npad)
        viol = d_col[:, t:t + 1] - d_row[t:t + 1, :] + margin          # (npad, npad)
        hit = (viol > 0.0) & pmask & nmask
        s_part = s_part + jnp.sum(jnp.where(hit, viol, 0.0), axis=0, keepdims=True)
        c_part = c_part + jnp.sum(hit.astype(f32), axis=0, keepdims=True)

    sum_scr[...] += jnp.sum(s_part, axis=1, keepdims=True)
    cnt_scr[...] += jnp.sum(c_part, axis=1, keepdims=True)

    # ---- last step: AvgNonZeroReducer (mean of strictly-positive losses) ----
    @pl.when(step == pl.num_programs(0) - 1)
    def _fin():
        tot = sum_scr[...]
        cnt = cnt_scr[...]
        out_ref[...] = jnp.where(cnt > 0.0, tot / jnp.maximum(cnt, 1.0), 0.0)


def triplet_margin_loss(embeddings, labels, margin=MARGIN, anchors_per_step=8):
    """embeddings: [N, D] float, labels: [N] int -> scalar float32 loss."""
    n, d = embeddings.shape
    ta = int(anchors_per_step)
    n_pad = ((n + ta - 1) // ta) * ta

    emb = embeddings.astype(jnp.float32)
    lab = labels.astype(jnp.int32)
    if n_pad != n:
        emb = jnp.pad(emb, ((0, n_pad - n), (0, 0)))
        lab = jnp.pad(lab, (0, n_pad - n))        # padded rows masked by index in-kernel
    lab_col = lab.reshape(n_pad, 1)
    lab_row = lab.reshape(1, n_pad)

    grid_spec = pltpu.PrefetchScalarGridSpec(
        num_scalar_prefetch=1,                    # labels -> SMEM for per-anchor scalar reads
        grid=(n_pad // ta,),
        in_specs=[
            pl.BlockSpec((n_pad, d), lambda i, lab_ref: (0, 0)),
            pl.BlockSpec((n_pad, 1), lambda i, lab_ref: (0, 0)),
            pl.BlockSpec((1, n_pad), lambda i, lab_ref: (0, 0)),
        ],
        out_specs=pl.BlockSpec((1, 1), lambda i, lab_ref: (0, 0)),
        scratch_shapes=[
            pltpu.VMEM((n_pad, d), jnp.float32),  # normalized embeddings (computed once)
            pltpu.VMEM((1, n_pad), jnp.float32),  # ||xn||^2 row form
            pltpu.VMEM((n_pad, 1), jnp.float32),  # ||xn||^2 column form
            pltpu.VMEM((1, 1), jnp.float32),      # running sum of positive losses
            pltpu.VMEM((1, 1), jnp.float32),      # running count of positive losses
        ],
    )

    out = pl.pallas_call(
        functools.partial(_triplet_kernel, margin=margin, ta=ta, n_real=n),
        grid_spec=grid_spec,
        out_shape=jax.ShapeDtypeStruct((1, 1), jnp.float32),
        compiler_params=pltpu.CompilerParams(dimension_semantics=("arbitrary",)),
    )(lab, emb, lab_col, lab_row)
    return out[0, 0]


def _reference_loss(emb, labels, margin=MARGIN):
    """Pure-JAX reference (same semantics) for a correctness check."""
    x = emb / jnp.maximum(jnp.linalg.norm(emb, axis=1, keepdims=True), 1e-12)
    diff = x[:, None, :] - x[None, :, :]
    d = jnp.sqrt(jnp.maximum(jnp.sum(diff * diff, axis=-1), 0.0))
    same = labels[:, None] == labels[None, :]
    n = emb.shape[0]
    ap = same & ~jnp.eye(n, dtype=bool)
    an = ~same
    viol = d[:, :, None] - d[:, None, :] + margin
    mask = (ap[:, :, None] & an[:, None, :]).astype(jnp.float32)
    l = jnp.maximum(viol, 0.0) * mask
    cnt = jnp.sum((l > 0.0).astype(jnp.float32))
    return jnp.where(cnt > 0.0, jnp.sum(l) / jnp.maximum(cnt, 1.0), 0.0)


if __name__ == "__main__":
    key = jax.random.PRNGKey(0)
    N, D = 8, 32
    embeddings = jax.random.normal(key, (N, D), dtype=jnp.float32)
    labels = jnp.array([0, 0, 1, 1, 2, 2, 3, 3], dtype=jnp.int32)

    loss = triplet_margin_loss(embeddings, labels)
    loss = jax.block_until_ready(loss)

    ref = jax.block_until_ready(_reference_loss(embeddings, labels))
    assert jnp.isfinite(loss), "loss is not finite"
    assert jnp.allclose(loss, ref, rtol=1e-4, atol=1e-4), (loss, ref)

    print("KERNEL_OK")
</pallas_src>

<mosaic_0001>
module attributes {stable_mosaic.version = 11 : i64} {
  func.func @_triplet_kernel(%arg0: i32, %arg1: memref<8xi32, #tpu.memory_space<smem>>, %arg2: memref<8x32xf32, #tpu.memory_space<vmem>>, %arg3: memref<8x1xi32, #tpu.memory_space<vmem>>, %arg4: memref<1x8xi32, #tpu.memory_space<vmem>>, %arg5: memref<1x1xf32, #tpu.memory_space<vmem>>, %arg6: memref<8x32xf32, #tpu.memory_space<vmem>>, %arg7: memref<1x8xf32, #tpu.memory_space<vmem>>, %arg8: memref<8x1xf32, #tpu.memory_space<vmem>>, %arg9: memref<1x1xf32, #tpu.memory_space<vmem>>, %arg10: memref<1x1xf32, #tpu.memory_space<vmem>>) attributes {dimension_semantics = [#tpu.dimension_semantics<arbitrary>], iteration_bounds = array<i64: 1>, scalar_prefetch = 1 : i64, scratch_operands = 5 : i64, tpu.core_type = #tpu.core_type<tc>, window_params = [{pipeline_mode = #tpu.pipeline_mode<synchronous>, transform_indices = @transform_0, window_bounds = array<i64: 8, 32>}, {pipeline_mode = #tpu.pipeline_mode<synchronous>, transform_indices = @transform_1, window_bounds = array<i64: 8, 1>}, {pipeline_mode = #tpu.pipeline_mode<synchronous>, transform_indices = @transform_2, window_bounds = array<i64: 1, 8>}, {pipeline_mode = #tpu.pipeline_mode<synchronous>, transform_indices = @transform_3, window_bounds = array<i64: 1, 1>}]} {
    %c0_i32 = arith.constant 0 : i32
    %0 = arith.cmpi eq, %arg0, %c0_i32 : i32
    %1 = arith.extui %0 : i1 to i32
    %c0_i32_0 = arith.constant 0 : i32
    %2 = arith.cmpi ne, %1, %c0_i32_0 : i32
    scf.if %2 {
      %c0_84 = arith.constant 0 : index
      %c0_85 = arith.constant 0 : index
      %362 = vector.load %arg2[%c0_84, %c0_85] : memref<8x32xf32, #tpu.memory_space<vmem>>, vector<8x32xf32>
      %363 = arith.mulf %362, %362 : vector<8x32xf32>
      %cst_86 = arith.constant dense<0.000000e+00> : vector<8xf32>
      %364 = vector.multi_reduction <add>, %363, %cst_86 [1] : vector<8x32xf32> to vector<8xf32>
      %365 = vector.shape_cast %364 : vector<8xf32> to vector<8x1xf32>
      %cst_87 = arith.constant 1.000000e-24 : f32
      %366 = vector.broadcast %cst_87 : f32 to vector<8x1xf32>
      %367 = arith.maximumf %365, %366 : vector<8x1xf32>
      %368 = math.rsqrt %367 : vector<8x1xf32>
      %369 = vector.broadcast %368 : vector<8x1xf32> to vector<8x32xf32>
      %370 = arith.mulf %362, %369 : vector<8x32xf32>
      %c0_88 = arith.constant 0 : index
      %c0_89 = arith.constant 0 : index
      %371 = vector.load %arg6[%c0_88, %c0_89] : memref<8x32xf32, #tpu.memory_space<vmem>>, vector<8x32xf32>
      tpu.vector_store %arg6[%c0_88, %c0_89], %370 {strides = array<i32>} : memref<8x32xf32, #tpu.memory_space<vmem>>, vector<8x32xf32>,
      %372 = arith.mulf %370, %370 : vector<8x32xf32>
      %cst_90 = arith.constant dense<0.000000e+00> : vector<8xf32>
      %373 = vector.multi_reduction <add>, %372, %cst_90 [1] : vector<8x32xf32> to vector<8xf32>
      %374 = vector.shape_cast %373 : vector<8xf32> to vector<8x1xf32>
      %c0_91 = arith.constant 0 : index
      %c0_92 = arith.constant 0 : index
      %375 = vector.load %arg8[%c0_91, %c0_92] : memref<8x1xf32, #tpu.memory_space<vmem>>, vector<8x1xf32>
      tpu.vector_store %arg8[%c0_91, %c0_92], %374 {strides = array<i32>} : memref<8x1xf32, #tpu.memory_space<vmem>>, vector<8x1xf32>,
      %cst_93 = arith.constant 1.000000e+00 : f32
      %376 = vector.broadcast %cst_93 : f32 to vector<1x32xf32>
      %cst_94 = arith.constant dense<0.000000e+00> : vector<1x8xf32>
      %377 = tpu.matmul %376, %372, %cst_94 {dimension_numbers = #tpu.dot_dimension_numbers<[1], [1], [0], [0], [0, 0, 1, 0], [], []>} : vector<1x32xf32>, vector<8x32xf32>, vector<1x8xf32> -> vector<1x8xf32>
      %c0_95 = arith.constant 0 : index
      %c0_96 = arith.constant 0 : index
      %378 = vector.load %arg7[%c0_95, %c0_96] : memref<1x8xf32, #tpu.memory_space<vmem>>, vector<1x8xf32>
      tpu.vector_store %arg7[%c0_95, %c0_96], %377 {strides = array<i32>} : memref<1x8xf32, #tpu.memory_space<vmem>>, vector<1x8xf32>,
      %cst_97 = arith.constant 0.000000e+00 : f32
      %379 = vector.broadcast %cst_97 : f32 to vector<1x1xf32>
      %c0_98 = arith.constant 0 : index
      %c0_99 = arith.constant 0 : index
      %380 = vector.load %arg9[%c0_98, %c0_99] : memref<1x1xf32, #tpu.memory_space<vmem>>, vector<1x1xf32>
      tpu.vector_store %arg9[%c0_98, %c0_99], %379 {strides = array<i32>} : memref<1x1xf32, #tpu.memory_space<vmem>>, vector<1x1xf32>,
      %cst_100 = arith.constant 0.000000e+00 : f32
      %381 = vector.broadcast %cst_100 : f32 to vector<1x1xf32>
      %c0_101 = arith.constant 0 : index
      %c0_102 = arith.constant 0 : index
      %382 = vector.load %arg10[%c0_101, %c0_102] : memref<1x1xf32, #tpu.memory_space<vmem>>, vector<1x1xf32>
      tpu.vector_store %arg10[%c0_101, %c0_102], %381 {strides = array<i32>} : memref<1x1xf32, #tpu.memory_space<vmem>>, vector<1x1xf32>,
    } else {
    }
    %c8_i32 = arith.constant 8 : i32
    %3 = arith.muli %arg0, %c8_i32 : i32
    %4 = tpu.assume_multiple %3, 8 : i32
    %c0 = arith.constant 0 : index
    %c0_1 = arith.constant 0 : index
    %5 = vector.load %arg6[%c0, %c0_1] : memref<8x32xf32, #tpu.memory_space<vmem>>, vector<8x32xf32>
    %6 = arith.index_cast %4 : i32 to index
    %c0_2 = arith.constant 0 : index
    %7 = vector.load %arg6[%6, %c0_2] : memref<8x32xf32, #tpu.memory_space<vmem>>, vector<8x32xf32>
    %c0_3 = arith.constant 0 : index
    %c0_4 = arith.constant 0 : index
    %8 = vector.load %arg8[%c0_3, %c0_4] : memref<8x1xf32, #tpu.memory_space<vmem>>, vector<8x1xf32>
    %c0_5 = arith.constant 0 : index
    %c0_6 = arith.constant 0 : index
    %9 = vector.load %arg7[%c0_5, %c0_6] : memref<1x8xf32, #tpu.memory_space<vmem>>, vector<1x8xf32>
    %10 = arith.index_cast %4 : i32 to index
    %c0_7 = arith.constant 0 : index
    %11 = vector.load %arg8[%10, %c0_7] : memref<8x1xf32, #tpu.memory_space<vmem>>, vector<8x1xf32>
    %cst = arith.constant 1.000000e+00 : f32
    %12 = vector.broadcast %cst : f32 to vector<1x32xf32>
    %13 = arith.mulf %7, %7 : vector<8x32xf32>
    %cst_8 = arith.constant dense<0.000000e+00> : vector<1x8xf32>
    %14 = tpu.matmul %12, %13, %cst_8 {dimension_numbers = #tpu.dot_dimension_numbers<[1], [1], [0], [0], [0, 0, 1, 0], [], []>} : vector<1x32xf32>, vector<8x32xf32>, vector<1x8xf32> -> vector<1x8xf32>
    %cst_9 = arith.constant dense<0.000000e+00> : vector<8x8xf32>
    %15 = tpu.matmul %7, %5, %cst_9 {dimension_numbers = #tpu.dot_dimension_numbers<[1], [1], [0], [0], [0, 0, 1, 0], [], []>} : vector<8x32xf32>, vector<8x32xf32>, vector<8x8xf32> -> vector<8x8xf32>
    %cst_10 = arith.constant dense<0.000000e+00> : vector<8x8xf32>
    %16 = tpu.matmul %5, %7, %cst_10 {dimension_numbers = #tpu.dot_dimension_numbers<[1], [1], [0], [0], [0, 0, 1, 0], [], []>} : vector<8x32xf32>, vector<8x32xf32>, vector<8x8xf32> -> vector<8x8xf32>
    %17 = vector.broadcast %11 : vector<8x1xf32> to vector<8x8xf32>
    %18 = vector.broadcast %9 : vector<1x8xf32> to vector<8x8xf32>
    %19 = arith.addf %17, %18 : vector<8x8xf32>
    %cst_11 = arith.constant 2.000000e+00 : f32
    %20 = vector.broadcast %cst_11 : f32 to vector<8x8xf32>
    %21 = arith.mulf %20, %15 : vector<8x8xf32>
    %22 = arith.subf %19, %21 : vector<8x8xf32>
    %cst_12 = arith.constant 0.000000e+00 : f32
    %23 = vector.broadcast %cst_12 : f32 to vector<8x8xf32>
    %24 = arith.maximumf %22, %23 : vector<8x8xf32>
    %25 = math.sqrt %24 : vector<8x8xf32>
    %26 = vector.broadcast %8 : vector<8x1xf32> to vector<8x8xf32>
    %27 = vector.broadcast %14 : vector<1x8xf32> to vector<8x8xf32>
    %28 = arith.addf %26, %27 : vector<8x8xf32>
    %cst_13 = arith.constant 2.000000e+00 : f32
    %29 = vector.broadcast %cst_13 : f32 to vector<8x8xf32>
    %30 = arith.mulf %29, %16 : vector<8x8xf32>
    %31 = arith.subf %28, %30 : vector<8x8xf32>
    %cst_14 = arith.constant 0.000000e+00 : f32
    %32 = vector.broadcast %cst_14 : f32 to vector<8x8xf32>
    %33 = arith.maximumf %31, %32 : vector<8x8xf32>
    %34 = math.sqrt %33 : vector<8x8xf32>
    %c0_15 = arith.constant 0 : index
    %c0_16 = arith.constant 0 : index
    %35 = vector.load %arg3[%c0_15, %c0_16] : memref<8x1xi32, #tpu.memory_space<vmem>>, vector<8x1xi32>
    %c0_17 = arith.constant 0 : index
    %c0_18 = arith.constant 0 : index
    %36 = vector.load %arg4[%c0_17, %c0_18] : memref<1x8xi32, #tpu.memory_space<vmem>>, vector<1x8xi32>
    %37 = tpu.iota {dimensions = array<i32: 0>} : vector<8x1xi32>
    %38 = tpu.iota {dimensions = array<i32: 1>} : vector<1x8xi32>
    %c8_i32_19 = arith.constant 8 : i32
    %39 = vector.broadcast %c8_i32_19 : i32 to vector<8x1xi32>
    %40 = arith.cmpi slt, %37, %39 : vector<8x1xi32>
    %c8_i32_20 = arith.constant 8 : i32
    %41 = vector.broadcast %c8_i32_20 : i32 to vector<1x8xi32>
    %42 = arith.cmpi slt, %38, %41 : vector<1x8xi32>
    %cst_21 = arith.constant 0.000000e+00 : f32
    %43 = vector.broadcast %cst_21 : f32 to vector<1x8xf32>
    %cst_22 = arith.constant 0.000000e+00 : f32
    %44 = vector.broadcast %cst_22 : f32 to vector<1x8xf32>
    %c0_i32_23 = arith.constant 0 : i32
    %45 = arith.addi %4, %c0_i32_23 : i32
    %46 = arith.index_cast %45 : i32 to index
    %47 = memref.load %arg1[%46] : memref<8xi32, #tpu.memory_space<smem>>
    %c8_i32_24 = arith.constant 8 : i32
    %48 = arith.cmpi slt, %45, %c8_i32_24 : i32
    %49 = vector.broadcast %47 : i32 to vector<8x1xi32>
    %50 = arith.cmpi eq, %35, %49 : vector<8x1xi32>
    %51 = vector.broadcast %45 : i32 to vector<8x1xi32>
    %52 = arith.cmpi ne, %37, %51 : vector<8x1xi32>
    %53 = arith.andi %50, %52 : vector<8x1xi1>
    %54 = arith.andi %53, %40 : vector<8x1xi1>
    %55 = vector.broadcast %48 : i1 to vector<8x1xi1>
    %56 = arith.andi %54, %55 : vector<8x1xi1>
    %57 = vector.broadcast %47 : i32 to vector<1x8xi32>
    %58 = arith.cmpi ne, %36, %57 : vector<1x8xi32>
    %59 = arith.andi %58, %42 : vector<1x8xi1>
    %60 = vector.extract_strided_slice %34 {offsets = [0, 0], sizes = [8, 1], strides = [1, 1]} : vector<8x8xf32> to vector<8x1xf32>
    %61 = vector.extract_strided_slice %25 {offsets = [0, 0], sizes = [1, 8], strides = [1, 1]} : vector<8x8xf32> to vector<1x8xf32>
    %62 = vector.broadcast %60 : vector<8x1xf32> to vector<8x8xf32>
    %63 = vector.broadcast %61 : vector<1x8xf32> to vector<8x8xf32>
    %64 = arith.subf %62, %63 : vector<8x8xf32>
    %cst_25 = arith.constant 2.000000e-01 : f32
    %65 = vector.broadcast %cst_25 : f32 to vector<8x8xf32>
    %66 = arith.addf %64, %65 : vector<8x8xf32>
    %cst_26 = arith.constant 0.000000e+00 : f32
    %67 = vector.broadcast %cst_26 : f32 to vector<8x8xf32>
    %68 = arith.cmpf ogt, %66, %67 : vector<8x8xf32>
    %69 = vector.broadcast %56 : vector<8x1xi1> to vector<8x8xi1>
    %70 = arith.andi %68, %69 : vector<8x8xi1>
    %71 = vector.broadcast %59 : vector<1x8xi1> to vector<8x8xi1>
    %72 = arith.andi %70, %71 : vector<8x8xi1>
    %cst_27 = arith.constant 0.000000e+00 : f32
    %73 = vector.broadcast %cst_27 : f32 to vector<8x8xf32>
    %74 = arith.select %72, %66, %73 : vector<8x8xi1>, vector<8x8xf32>
    %cst_28 = arith.constant dense<0.000000e+00> : vector<8xf32>
    %75 = vector.multi_reduction <add>, %74, %cst_28 [0] : vector<8x8xf32> to vector<8xf32>
    %76 = vector.shape_cast %75 : vector<8xf32> to vector<1x8xf32>
    %77 = arith.addf %43, %76 : vector<1x8xf32>
    %78 = arith.extui %72 : vector<8x8xi1> to vector<8x8xi32>
    %79 = arith.sitofp %78 : vector<8x8xi32> to vector<8x8xf32>
    %cst_29 = arith.constant dense<0.000000e+00> : vector<8xf32>
    %80 = vector.multi_reduction <add>, %79, %cst_29 [0] : vector<8x8xf32> to vector<8xf32>
    %81 = vector.shape_cast %80 : vector<8xf32> to vector<1x8xf32>
    %82 = arith.addf %44, %81 : vector<1x8xf32>
    %c1_i32 = arith.constant 1 : i32
    %83 = arith.addi %4, %c1_i32 : i32
    %84 = arith.index_cast %83 : i32 to index
    %85 = memref.load %arg1[%84] : memref<8xi32, #tpu.memory_space<smem>>
    %c8_i32_30 = arith.constant 8 : i32
    %86 = arith.cmpi slt, %83, %c8_i32_30 : i32
    %87 = vector.broadcast %85 : i32 to vector<8x1xi32>
    %88 = arith.cmpi eq, %35, %87 : vector<8x1xi32>
    %89 = vector.broadcast %83 : i32 to vector<8x1xi32>
    %90 = arith.cmpi ne, %37, %89 : vector<8x1xi32>
    %91 = arith.andi %88, %90 : vector<8x1xi1>
    %92 = arith.andi %91, %40 : vector<8x1xi1>
    %93 = vector.broadcast %86 : i1 to vector<8x1xi1>
    %94 = arith.andi %92, %93 : vector<8x1xi1>
    %95 = vector.broadcast %85 : i32 to vector<1x8xi32>
    %96 = arith.cmpi ne, %36, %95 : vector<1x8xi32>
    %97 = arith.andi %96, %42 : vector<1x8xi1>
    %98 = vector.extract_strided_slice %34 {offsets = [0, 1], sizes = [8, 1], strides = [1, 1]} : vector<8x8xf32> to vector<8x1xf32>
    %99 = vector.extract_strided_slice %25 {offsets = [1, 0], sizes = [1, 8], strides = [1, 1]} : vector<8x8xf32> to vector<1x8xf32>
    %100 = vector.broadcast %98 : vector<8x1xf32> to vector<8x8xf32>
    %101 = vector.broadcast %99 : vector<1x8xf32> to vector<8x8xf32>
    %102 = arith.subf %100, %101 : vector<8x8xf32>
    %cst_31 = arith.constant 2.000000e-01 : f32
    %103 = vector.broadcast %cst_31 : f32 to vector<8x8xf32>
    %104 = arith.addf %102, %103 : vector<8x8xf32>
    %cst_32 = arith.constant 0.000000e+00 : f32
    %105 = vector.broadcast %cst_32 : f32 to vector<8x8xf32>
    %106 = arith.cmpf ogt, %104, %105 : vector<8x8xf32>
    %107 = vector.broadcast %94 : vector<8x1xi1> to vector<8x8xi1>
    %108 = arith.andi %106, %107 : vector<8x8xi1>
    %109 = vector.broadcast %97 : vector<1x8xi1> to vector<8x8xi1>
    %110 = arith.andi %108, %109 : vector<8x8xi1>
    %cst_33 = arith.constant 0.000000e+00 : f32
    %111 = vector.broadcast %cst_33 : f32 to vector<8x8xf32>
    %112 = arith.select %110, %104, %111 : vector<8x8xi1>, vector<8x8xf32>
    %cst_34 = arith.constant dense<0.000000e+00> : vector<8xf32>
    %113 = vector.multi_reduction <add>, %112, %cst_34 [0] : vector<8x8xf32> to vector<8xf32>
    %114 = vector.shape_cast %113 : vector<8xf32> to vector<1x8xf32>
    %115 = arith.addf %77, %114 : vector<1x8xf32>
    %116 = arith.extui %110 : vector<8x8xi1> to vector<8x8xi32>
    %117 = arith.sitofp %116 : vector<8x8xi32> to vector<8x8xf32>
    %cst_35 = arith.constant dense<0.000000e+00> : vector<8xf32>
    %118 = vector.multi_reduction <add>, %117, %cst_35 [0] : vector<8x8xf32> to vector<8xf32>
    %119 = vector.shape_cast %118 : vector<8xf32> to vector<1x8xf32>
    %120 = arith.addf %82, %119 : vector<1x8xf32>
    %c2_i32 = arith.constant 2 : i32
    %121 = arith.addi %4, %c2_i32 : i32
    %122 = arith.index_cast %121 : i32 to index
    %123 = memref.load %arg1[%122] : memref<8xi32, #tpu.memory_space<smem>>
    %c8_i32_36 = arith.constant 8 : i32
    %124 = arith.cmpi slt, %121, %c8_i32_36 : i32
    %125 = vector.broadcast %123 : i32 to vector<8x1xi32>
    %126 = arith.cmpi eq, %35, %125 : vector<8x1xi32>
    %127 = vector.broadcast %121 : i32 to vector<8x1xi32>
    %128 = arith.cmpi ne, %37, %127 : vector<8x1xi32>
    %129 = arith.andi %126, %128 : vector<8x1xi1>
    %130 = arith.andi %129, %40 : vector<8x1xi1>
    %131 = vector.broadcast %124 : i1 to vector<8x1xi1>
    %132 = arith.andi %130, %131 : vector<8x1xi1>
    %133 = vector.broadcast %123 : i32 to vector<1x8xi32>
    %134 = arith.cmpi ne, %36, %133 : vector<1x8xi32>
    %135 = arith.andi %134, %42 : vector<1x8xi1>
    %136 = vector.extract_strided_slice %34 {offsets = [0, 2], sizes = [8, 1], strides = [1, 1]} : vector<8x8xf32> to vector<8x1xf32>
    %137 = vector.extract_strided_slice %25 {offsets = [2, 0], sizes = [1, 8], strides = [1, 1]} : vector<8x8xf32> to vector<1x8xf32>
    %138 = vector.broadcast %136 : vector<8x1xf32> to vector<8x8xf32>
    %139 = vector.broadcast %137 : vector<1x8xf32> to vector<8x8xf32>
    %140 = arith.subf %138, %139 : vector<8x8xf32>
    %cst_37 = arith.constant 2.000000e-01 : f32
    %141 = vector.broadcast %cst_37 : f32 to vector<8x8xf32>
    %142 = arith.addf %140, %141 : vector<8x8xf32>
    %cst_38 = arith.constant 0.000000e+00 : f32
    %143 = vector.broadcast %cst_38 : f32 to vector<8x8xf32>
    %144 = arith.cmpf ogt, %142, %143 : vector<8x8xf32>
    %145 = vector.broadcast %132 : vector<8x1xi1> to vector<8x8xi1>
    %146 = arith.andi %144, %145 : vector<8x8xi1>
    %147 = vector.broadcast %135 : vector<1x8xi1> to vector<8x8xi1>
    %148 = arith.andi %146, %147 : vector<8x8xi1>
    %cst_39 = arith.constant 0.000000e+00 : f32
    %149 = vector.broadcast %cst_39 : f32 to vector<8x8xf32>
    %150 = arith.select %148, %142, %149 : vector<8x8xi1>, vector<8x8xf32>
    %cst_40 = arith.constant dense<0.000000e+00> : vector<8xf32>
    %151 = vector.multi_reduction <add>, %150, %cst_40 [0] : vector<8x8xf32> to vector<8xf32>
    %152 = vector.shape_cast %151 : vector<8xf32> to vector<1x8xf32>
    %153 = arith.addf %115, %152 : vector<1x8xf32>
    %154 = arith.extui %148 : vector<8x8xi1> to vector<8x8xi32>
    %155 = arith.sitofp %154 : vector<8x8xi32> to vector<8x8xf32>
    %cst_41 = arith.constant dense<0.000000e+00> : vector<8xf32>
    %156 = vector.multi_reduction <add>, %155, %cst_41 [0] : vector<8x8xf32> to vector<8xf32>
    %157 = vector.shape_cast %156 : vector<8xf32> to vector<1x8xf32>
    %158 = arith.addf %120, %157 : vector<1x8xf32>
    %c3_i32 = arith.constant 3 : i32
    %159 = arith.addi %4, %c3_i32 : i32
    %160 = arith.index_cast %159 : i32 to index
    %161 = memref.load %arg1[%160] : memref<8xi32, #tpu.memory_space<smem>>
    %c8_i32_42 = arith.constant 8 : i32
    %162 = arith.cmpi slt, %159, %c8_i32_42 : i32
    %163 = vector.broadcast %161 : i32 to vector<8x1xi32>
    %164 = arith.cmpi eq, %35, %163 : vector<8x1xi32>
    %165 = vector.broadcast %159 : i32 to vector<8x1xi32>
    %166 = arith.cmpi ne, %37, %165 : vector<8x1xi32>
    %167 = arith.andi %164, %166 : vector<8x1xi1>
    %168 = arith.andi %167, %40 : vector<8x1xi1>
    %169 = vector.broadcast %162 : i1 to vector<8x1xi1>
    %170 = arith.andi %168, %169 : vector<8x1xi1>
    %171 = vector.broadcast %161 : i32 to vector<1x8xi32>
    %172 = arith.cmpi ne, %36, %171 : vector<1x8xi32>
    %173 = arith.andi %172, %42 : vector<1x8xi1>
    %174 = vector.extract_strided_slice %34 {offsets = [0, 3], sizes = [8, 1], strides = [1, 1]} : vector<8x8xf32> to vector<8x1xf32>
    %175 = vector.extract_strided_slice %25 {offsets = [3, 0], sizes = [1, 8], strides = [1, 1]} : vector<8x8xf32> to vector<1x8xf32>
    %176 = vector.broadcast %174 : vector<8x1xf32> to vector<8x8xf32>
    %177 = vector.broadcast %175 : vector<1x8xf32> to vector<8x8xf32>
    %178 = arith.subf %176, %177 : vector<8x8xf32>
    %cst_43 = arith.constant 2.000000e-01 : f32
    %179 = vector.broadcast %cst_43 : f32 to vector<8x8xf32>
    %180 = arith.addf %178, %179 : vector<8x8xf32>
    %cst_44 = arith.constant 0.000000e+00 : f32
    %181 = vector.broadcast %cst_44 : f32 to vector<8x8xf32>
    %182 = arith.cmpf ogt, %180, %181 : vector<8x8xf32>
    %183 = vector.broadcast %170 : vector<8x1xi1> to vector<8x8xi1>
    %184 = arith.andi %182, %183 : vector<8x8xi1>
    %185 = vector.broadcast %173 : vector<1x8xi1> to vector<8x8xi1>
    %186 = arith.andi %184, %185 : vector<8x8xi1>
    %cst_45 = arith.constant 0.000000e+00 : f32
    %187 = vector.broadcast %cst_45 : f32 to vector<8x8xf32>
    %188 = arith.select %186, %180, %187 : vector<8x8xi1>, vector<8x8xf32>
    %cst_46 = arith.constant dense<0.000000e+00> : vector<8xf32>
    %189 = vector.multi_reduction <add>, %188, %cst_46 [0] : vector<8x8xf32> to vector<8xf32>
    %190 = vector.shape_cast %189 : vector<8xf32> to vector<1x8xf32>
    %191 = arith.addf %153, %190 : vector<1x8xf32>
    %192 = arith.extui %186 : vector<8x8xi1> to vector<8x8xi32>
    %193 = arith.sitofp %192 : vector<8x8xi32> to vector<8x8xf32>
    %cst_47 = arith.constant dense<0.000000e+00> : vector<8xf32>
    %194 = vector.multi_reduction <add>, %193, %cst_47 [0] : vector<8x8xf32> to vector<8xf32>
    %195 = vector.shape_cast %194 : vector<8xf32> to vector<1x8xf32>
    %196 = arith.addf %158, %195 : vector<1x8xf32>
    %c4_i32 = arith.constant 4 : i32
    %197 = arith.addi %4, %c4_i32 : i32
    %198 = arith.index_cast %197 : i32 to index
    %199 = memref.load %arg1[%198] : memref<8xi32, #tpu.memory_space<smem>>
    %c8_i32_48 = arith.constant 8 : i32
    %200 = arith.cmpi slt, %197, %c8_i32_48 : i32
    %201 = vector.broadcast %199 : i32 to vector<8x1xi32>
    %202 = arith.cmpi eq, %35, %201 : vector<8x1xi32>
    %203 = vector.broadcast %197 : i32 to vector<8x1xi32>
    %204 = arith.cmpi ne, %37, %203 : vector<8x1xi32>
    %205 = arith.andi %202, %204 : vector<8x1xi1>
    %206 = arith.andi %205, %40 : vector<8x1xi1>
    %207 = vector.broadcast %200 : i1 to vector<8x1xi1>
    %208 = arith.andi %206, %207 : vector<8x1xi1>
    %209 = vector.broadcast %199 : i32 to vector<1x8xi32>
    %210 = arith.cmpi ne, %36, %209 : vector<1x8xi32>
    %211 = arith.andi %210, %42 : vector<1x8xi1>
    %212 = vector.extract_strided_slice %34 {offsets = [0, 4], sizes = [8, 1], strides = [1, 1]} : vector<8x8xf32> to vector<8x1xf32>
    %213 = vector.extract_strided_slice %25 {offsets = [4, 0], sizes = [1, 8], strides = [1, 1]} : vector<8x8xf32> to vector<1x8xf32>
    %214 = vector.broadcast %212 : vector<8x1xf32> to vector<8x8xf32>
    %215 = vector.broadcast %213 : vector<1x8xf32> to vector<8x8xf32>
    %216 = arith.subf %214, %215 : vector<8x8xf32>
    %cst_49 = arith.constant 2.000000e-01 : f32
    %217 = vector.broadcast %cst_49 : f32 to vector<8x8xf32>
    %218 = arith.addf %216, %217 : vector<8x8xf32>
    %cst_50 = arith.constant 0.000000e+00 : f32
    %219 = vector.broadcast %cst_50 : f32 to vector<8x8xf32>
    %220 = arith.cmpf ogt, %218, %219 : vector<8x8xf32>
    %221 = vector.broadcast %208 : vector<8x1xi1> to vector<8x8xi1>
    %222 = arith.andi %220, %221 : vector<8x8xi1>
    %223 = vector.broadcast %211 : vector<1x8xi1> to vector<8x8xi1>
    %224 = arith.andi %222, %223 : vector<8x8xi1>
    %cst_51 = arith.constant 0.000000e+00 : f32
    %225 = vector.broadcast %cst_51 : f32 to vector<8x8xf32>
    %226 = arith.select %224, %218, %225 : vector<8x8xi1>, vector<8x8xf32>
    %cst_52 = arith.constant dense<0.000000e+00> : vector<8xf32>
    %227 = vector.multi_reduction <add>, %226, %cst_52 [0] : vector<8x8xf32> to vector<8xf32>
    %228 = vector.shape_cast %227 : vector<8xf32> to vector<1x8xf32>
    %229 = arith.addf %191, %228 : vector<1x8xf32>
    %230 = arith.extui %224 : vector<8x8xi1> to vector<8x8xi32>
    %231 = arith.sitofp %230 : vector<8x8xi32> to vector<8x8xf32>
    %cst_53 = arith.constant dense<0.000000e+00> : vector<8xf32>
    %232 = vector.multi_reduction <add>, %231, %cst_53 [0] : vector<8x8xf32> to vector<8xf32>
    %233 = vector.shape_cast %232 : vector<8xf32> to vector<1x8xf32>
    %234 = arith.addf %196, %233 : vector<1x8xf32>
    %c5_i32 = arith.constant 5 : i32
    %235 = arith.addi %4, %c5_i32 : i32
    %236 = arith.index_cast %235 : i32 to index
    %237 = memref.load %arg1[%236] : memref<8xi32, #tpu.memory_space<smem>>
    %c8_i32_54 = arith.constant 8 : i32
    %238 = arith.cmpi slt, %235, %c8_i32_54 : i32
    %239 = vector.broadcast %237 : i32 to vector<8x1xi32>
    %240 = arith.cmpi eq, %35, %239 : vector<8x1xi32>
    %241 = vector.broadcast %235 : i32 to vector<8x1xi32>
    %242 = arith.cmpi ne, %37, %241 : vector<8x1xi32>
    %243 = arith.andi %240, %242 : vector<8x1xi1>
    %244 = arith.andi %243, %40 : vector<8x1xi1>
    %245 = vector.broadcast %238 : i1 to vector<8x1xi1>
    %246 = arith.andi %244, %245 : vector<8x1xi1>
    %247 = vector.broadcast %237 : i32 to vector<1x8xi32>
    %248 = arith.cmpi ne, %36, %247 : vector<1x8xi32>
    %249 = arith.andi %248, %42 : vector<1x8xi1>
    %250 = vector.extract_strided_slice %34 {offsets = [0, 5], sizes = [8, 1], strides = [1, 1]} : vector<8x8xf32> to vector<8x1xf32>
    %251 = vector.extract_strided_slice %25 {offsets = [5, 0], sizes = [1, 8], strides = [1, 1]} : vector<8x8xf32> to vector<1x8xf32>
    %252 = vector.broadcast %250 : vector<8x1xf32> to vector<8x8xf32>
    %253 = vector.broadcast %251 : vector<1x8xf32> to vector<8x8xf32>
    %254 = arith.subf %252, %253 : vector<8x8xf32>
    %cst_55 = arith.constant 2.000000e-01 : f32
    %255 = vector.broadcast %cst_55 : f32 to vector<8x8xf32>
    %256 = arith.addf %254, %255 : vector<8x8xf32>
    %cst_56 = arith.constant 0.000000e+00 : f32
    %257 = vector.broadcast %cst_56 : f32 to vector<8x8xf32>
    %258 = arith.cmpf ogt, %256, %257 : vector<8x8xf32>
    %259 = vector.broadcast %246 : vector<8x1xi1> to vector<8x8xi1>
    %260 = arith.andi %258, %259 : vector<8x8xi1>
    %261 = vector.broadcast %249 : vector<1x8xi1> to vector<8x8xi1>
    %262 = arith.andi %260, %261 : vector<8x8xi1>
    %cst_57 = arith.constant 0.000000e+00 : f32
    %263 = vector.broadcast %cst_57 : f32 to vector<8x8xf32>
    %264 = arith.select %262, %256, %263 : vector<8x8xi1>, vector<8x8xf32>
    %cst_58 = arith.constant dense<0.000000e+00> : vector<8xf32>
    %265 = vector.multi_reduction <add>, %264, %cst_58 [0] : vector<8x8xf32> to vector<8xf32>
    %266 = vector.shape_cast %265 : vector<8xf32> to vector<1x8xf32>
    %267 = arith.addf %229, %266 : vector<1x8xf32>
    %268 = arith.extui %262 : vector<8x8xi1> to vector<8x8xi32>
    %269 = arith.sitofp %268 : vector<8x8xi32> to vector<8x8xf32>
    %cst_59 = arith.constant dense<0.000000e+00> : vector<8xf32>
    %270 = vector.multi_reduction <add>, %269, %cst_59 [0] : vector<8x8xf32> to vector<8xf32>
    %271 = vector.shape_cast %270 : vector<8xf32> to vector<1x8xf32>
    %272 = arith.addf %234, %271 : vector<1x8xf32>
    %c6_i32 = arith.constant 6 : i32
    %273 = arith.addi %4, %c6_i32 : i32
    %274 = arith.index_cast %273 : i32 to index
    %275 = memref.load %arg1[%274] : memref<8xi32, #tpu.memory_space<smem>>
    %c8_i32_60 = arith.constant 8 : i32
    %276 = arith.cmpi slt, %273, %c8_i32_60 : i32
    %277 = vector.broadcast %275 : i32 to vector<8x1xi32>
    %278 = arith.cmpi eq, %35, %277 : vector<8x1xi32>
    %279 = vector.broadcast %273 : i32 to vector<8x1xi32>
    %280 = arith.cmpi ne, %37, %279 : vector<8x1xi32>
    %281 = arith.andi %278, %280 : vector<8x1xi1>
    %282 = arith.andi %281, %40 : vector<8x1xi1>
    %283 = vector.broadcast %276 : i1 to vector<8x1xi1>
    %284 = arith.andi %282, %283 : vector<8x1xi1>
    %285 = vector.broadcast %275 : i32 to vector<1x8xi32>
    %286 = arith.cmpi ne, %36, %285 : vector<1x8xi32>
    %287 = arith.andi %286, %42 : vector<1x8xi1>
    %288 = vector.extract_strided_slice %34 {offsets = [0, 6], sizes = [8, 1], strides = [1, 1]} : vector<8x8xf32> to vector<8x1xf32>
    %289 = vector.extract_strided_slice %25 {offsets = [6, 0], sizes = [1, 8], strides = [1, 1]} : vector<8x8xf32> to vector<1x8xf32>
    %290 = vector.broadcast %288 : vector<8x1xf32> to vector<8x8xf32>
    %291 = vector.broadcast %289 : vector<1x8xf32> to vector<8x8xf32>
    %292 = arith.subf %290, %291 : vector<8x8xf32>
    %cst_61 = arith.constant 2.000000e-01 : f32
    %293 = vector.broadcast %cst_61 : f32 to vector<8x8xf32>
    %294 = arith.addf %292, %293 : vector<8x8xf32>
    %cst_62 = arith.constant 0.000000e+00 : f32
    %295 = vector.broadcast %cst_62 : f32 to vector<8x8xf32>
    %296 = arith.cmpf ogt, %294, %295 : vector<8x8xf32>
    %297 = vector.broadcast %284 : vector<8x1xi1> to vector<8x8xi1>
    %298 = arith.andi %296, %297 : vector<8x8xi1>
    %299 = vector.broadcast %287 : vector<1x8xi1> to vector<8x8xi1>
    %300 = arith.andi %298, %299 : vector<8x8xi1>
    %cst_63 = arith.constant 0.000000e+00 : f32
    %301 = vector.broadcast %cst_63 : f32 to vector<8x8xf32>
    %302 = arith.select %300, %294, %301 : vector<8x8xi1>, vector<8x8xf32>
    %cst_64 = arith.constant dense<0.000000e+00> : vector<8xf32>
    %303 = vector.multi_reduction <add>, %302, %cst_64 [0] : vector<8x8xf32> to vector<8xf32>
    %304 = vector.shape_cast %303 : vector<8xf32> to vector<1x8xf32>
    %305 = arith.addf %267, %304 : vector<1x8xf32>
    %306 = arith.extui %300 : vector<8x8xi1> to vector<8x8xi32>
    %307 = arith.sitofp %306 : vector<8x8xi32> to vector<8x8xf32>
    %cst_65 = arith.constant dense<0.000000e+00> : vector<8xf32>
    %308 = vector.multi_reduction <add>, %307, %cst_65 [0] : vector<8x8xf32> to vector<8xf32>
    %309 = vector.shape_cast %308 : vector<8xf32> to vector<1x8xf32>
    %310 = arith.addf %272, %309 : vector<1x8xf32>
    %c7_i32 = arith.constant 7 : i32
    %311 = arith.addi %4, %c7_i32 : i32
    %312 = arith.index_cast %311 : i32 to index
    %313 = memref.load %arg1[%312] : memref<8xi32, #tpu.memory_space<smem>>
    %c8_i32_66 = arith.constant 8 : i32
    %314 = arith.cmpi slt, %311, %c8_i32_66 : i32
    %315 = vector.broadcast %313 : i32 to vector<8x1xi32>
    %316 = arith.cmpi eq, %35, %315 : vector<8x1xi32>
    %317 = vector.broadcast %311 : i32 to vector<8x1xi32>
    %318 = arith.cmpi ne, %37, %317 : vector<8x1xi32>
    %319 = arith.andi %316, %318 : vector<8x1xi1>
    %320 = arith.andi %319, %40 : vector<8x1xi1>
    %321 = vector.broadcast %314 : i1 to vector<8x1xi1>
    %322 = arith.andi %320, %321 : vector<8x1xi1>
    %323 = vector.broadcast %313 : i32 to vector<1x8xi32>
    %324 = arith.cmpi ne, %36, %323 : vector<1x8xi32>
    %325 = arith.andi %324, %42 : vector<1x8xi1>
    %326 = vector.extract_strided_slice %34 {offsets = [0, 7], sizes = [8, 1], strides = [1, 1]} : vector<8x8xf32> to vector<8x1xf32>
    %327 = vector.extract_strided_slice %25 {offsets = [7, 0], sizes = [1, 8], strides = [1, 1]} : vector<8x8xf32> to vector<1x8xf32>
    %328 = vector.broadcast %326 : vector<8x1xf32> to vector<8x8xf32>
    %329 = vector.broadcast %327 : vector<1x8xf32> to vector<8x8xf32>
    %330 = arith.subf %328, %329 : vector<8x8xf32>
    %cst_67 = arith.constant 2.000000e-01 : f32
    %331 = vector.broadcast %cst_67 : f32 to vector<8x8xf32>
    %332 = arith.addf %330, %331 : vector<8x8xf32>
    %cst_68 = arith.constant 0.000000e+00 : f32
    %333 = vector.broadcast %cst_68 : f32 to vector<8x8xf32>
    %334 = arith.cmpf ogt, %332, %333 : vector<8x8xf32>
    %335 = vector.broadcast %322 : vector<8x1xi1> to vector<8x8xi1>
    %336 = arith.andi %334, %335 : vector<8x8xi1>
    %337 = vector.broadcast %325 : vector<1x8xi1> to vector<8x8xi1>
    %338 = arith.andi %336, %337 : vector<8x8xi1>
    %cst_69 = arith.constant 0.000000e+00 : f32
    %339 = vector.broadcast %cst_69 : f32 to vector<8x8xf32>
    %340 = arith.select %338, %332, %339 : vector<8x8xi1>, vector<8x8xf32>
    %cst_70 = arith.constant dense<0.000000e+00> : vector<8xf32>
    %341 = vector.multi_reduction <add>, %340, %cst_70 [0] : vector<8x8xf32> to vector<8xf32>
    %342 = vector.shape_cast %341 : vector<8xf32> to vector<1x8xf32>
    %343 = arith.addf %305, %342 : vector<1x8xf32>
    %344 = arith.extui %338 : vector<8x8xi1> to vector<8x8xi32>
    %345 = arith.sitofp %344 : vector<8x8xi32> to vector<8x8xf32>
    %cst_71 = arith.constant dense<0.000000e+00> : vector<8xf32>
    %346 = vector.multi_reduction <add>, %345, %cst_71 [0] : vector<8x8xf32> to vector<8xf32>
    %347 = vector.shape_cast %346 : vector<8xf32> to vector<1x8xf32>
    %348 = arith.addf %310, %347 : vector<1x8xf32>
    %c0_72 = arith.constant 0 : index
    %c0_73 = arith.constant 0 : index
    %349 = vector.load %arg9[%c0_72, %c0_73] : memref<1x1xf32, #tpu.memory_space<vmem>>, vector<1x1xf32>
    %cst_74 = arith.constant dense<0.000000e+00> : vector<1xf32>
    %350 = vector.multi_reduction <add>, %343, %cst_74 [1] : vector<1x8xf32> to vector<1xf32>
    %351 = vector.shape_cast %350 : vector<1xf32> to vector<1x1xf32>
    %352 = arith.addf %349, %351 : vector<1x1xf32>
    %c0_75 = arith.constant 0 : index
    %c0_76 = arith.constant 0 : index
    %353 = vector.load %arg9[%c0_75, %c0_76] : memref<1x1xf32, #tpu.memory_space<vmem>>, vector<1x1xf32>
    tpu.vector_store %arg9[%c0_75, %c0_76], %352 {strides = array<i32>} : memref<1x1xf32, #tpu.memory_space<vmem>>, vector<1x1xf32>,
    %c0_77 = arith.constant 0 : index
    %c0_78 = arith.constant 0 : index
    %354 = vector.load %arg10[%c0_77, %c0_78] : memref<1x1xf32, #tpu.memory_space<vmem>>, vector<1x1xf32>
    %cst_79 = arith.constant dense<0.000000e+00> : vector<1xf32>
    %355 = vector.multi_reduction <add>, %348, %cst_79 [1] : vector<1x8xf32> to vector<1xf32>
    %356 = vector.shape_cast %355 : vector<1xf32> to vector<1x1xf32>
    %357 = arith.addf %354, %356 : vector<1x1xf32>
    %c0_80 = arith.constant 0 : index
    %c0_81 = arith.constant 0 : index
    %358 = vector.load %arg10[%c0_80, %c0_81] : memref<1x1xf32, #tpu.memory_space<vmem>>, vector<1x1xf32>
    tpu.vector_store %arg10[%c0_80, %c0_81], %357 {strides = array<i32>} : memref<1x1xf32, #tpu.memory_space<vmem>>, vector<1x1xf32>,
    %c0_i32_82 = arith.constant 0 : i32
    %359 = arith.cmpi eq, %arg0, %c0_i32_82 : i32
    %360 = arith.extui %359 : i1 to i32
    %c0_i32_83 = arith.constant 0 : i32
    %361 = arith.cmpi ne, %360, %c0_i32_83 : i32
    scf.if %361 {
      %c0_84 = arith.constant 0 : index
      %c0_85 = arith.constant 0 : index
      %362 = vector.load %arg9[%c0_84, %c0_85] : memref<1x1xf32, #tpu.memory_space<vmem>>, vector<1x1xf32>
      %c0_86 = arith.constant 0 : index
      %c0_87 = arith.constant 0 : index
      %363 = vector.load %arg10[%c0_86, %c0_87] : memref<1x1xf32, #tpu.memory_space<vmem>>, vector<1x1xf32>
      %cst_88 = arith.constant 0.000000e+00 : f32
      %364 = vector.broadcast %cst_88 : f32 to vector<1x1xf32>
      %365 = arith.cmpf ogt, %363, %364 : vector<1x1xf32>
      %cst_89 = arith.constant 1.000000e+00 : f32
      %366 = vector.broadcast %cst_89 : f32 to vector<1x1xf32>
      %367 = arith.maximumf %363, %366 : vector<1x1xf32>
      %368 = arith.divf %362, %367 : vector<1x1xf32>
      %cst_90 = arith.constant 0.000000e+00 : f32
      %369 = vector.broadcast %cst_90 : f32 to vector<1x1xf32>
      %370 = arith.select %365, %368, %369 : vector<1x1xi1>, vector<1x1xf32>
      %c0_91 = arith.constant 0 : index
      %c0_92 = arith.constant 0 : index
      %371 = vector.load %arg5[%c0_91, %c0_92] : memref<1x1xf32, #tpu.memory_space<vmem>>, vector<1x1xf32>
      tpu.vector_store %arg5[%c0_91, %c0_92], %370 {strides = array<i32>} : memref<1x1xf32, #tpu.memory_space<vmem>>, vector<1x1xf32>,
    } else {
    }
    return
  }
  func.func @transform_0(%arg0: i32, %arg1: memref<8xi32, #tpu.memory_space<smem>>) -> (i32, i32) {
    %c0_i32 = arith.constant 0 : i32
    %c0_i32_0 = arith.constant 0 : i32
    %c0_i32_1 = arith.constant 0 : i32
    return %c0_i32, %c0_i32_0 : i32, i32
  }
  func.func @transform_1(%arg0: i32, %arg1: memref<8xi32, #tpu.memory_space<smem>>) -> (i32, i32) {
    %c0_i32 = arith.constant 0 : i32
    %c0_i32_0 = arith.constant 0 : i32
    %c0_i32_1 = arith.constant 0 : i32
    return %c0_i32, %c0_i32_0 : i32, i32
  }
  func.func @transform_2(%arg0: i32, %arg1: memref<8xi32, #tpu.memory_space<smem>>) -> (i32, i32) {
    %c0_i32 = arith.constant 0 : i32
    %c0_i32_0 = arith.constant 0 : i32
    %c0_i32_1 = arith.constant 0 : i32
    return %c0_i32, %c0_i32_0 : i32, i32
  }
  func.func @transform_3(%arg0: i32, %arg1: memref<8xi32, #tpu.memory_space<smem>>) -> (i32, i32) {
    %c0_i32 = arith.constant 0 : i32
    %c0_i32_0 = arith.constant 0 : i32
    %c0_i32_1 = arith.constant 0 : i32
    return %c0_i32, %c0_i32_0 : i32, i32
  }
}

</mosaic_0001>

<bundles_post_ra>
// kernel: tpu_custom_call.1
= control target key start
LH: loop header
LB: loop body
LE: loop exit
PB: predicated region body
PF: predicated region fallthrough
CT: control target
= control target key end

     0   :  { %s786_s18 = smov [#allocation8]   ;;  %s1132_s0 = inlined_call_operand.vmem [shape: s32[8], index: 0, kind: input, shape index: {}]   ;;  %s1133_s1 = inlined_call_operand.vmem [shape: f32[8,32], index: 1, kind: input, shape index: {}]   ;;  %s1134_s2 = inlined_call_operand.vmem [shape: s32[8,1], index: 2, kind: input, shape index: {}]   ;;  %s1135_s3 = inlined_call_operand.vmem [shape: s32[1,8], index: 3, kind: input, shape index: {}]   ;;  %s1136_s4 = inlined_call_operand.hbm [shape: f32[1,1], index: 4, kind: output, shape index: {}]  }
   0x1   :  { %s10_s17 = sshll.u32 %s1132_s0, 4  ;;  %s11_s17 = int_to_ptr.vmem [resolvable:$true] %s10_s17 }
   0x2   :  { %13 = dma.vmem_to_smem %s11_s17, 16, %s786_s18, [#allocation7] }
   0x3   :  { %782 = dma.done.wait [#allocation7], 16 }
   0x4   :  { %783 = vsyncadd [#allocation7], 4294967280 }
   0x5   :  { %16 = sfence }
   0x6   :  { %v28_v0 = vld [vmem:[%s1133_s1] sm:$0xff]  ;;  %vm30_vm0 = vcmask 261120  }
   0x7   :  { %17 = vsyncpa [#allocation10], 0  ;;  %v29_v1 = vmul.f32 %v28_v0, %v28_v0  ;;  %v787_v15 = vmov 1.0   ;;  %v788_v18 = vmov 0   ;;  %s699_s0 = sld [smem:[#allocation8 + $0x1]]  ;;  %v214_v19 = vlaneseq  ;;  %v847_v21 = vld [vmem:[%s1134_s2] sm:$0xff] }
   0x8   :  { %725 = vset.pattern.permute.xlu1 %v788_v18  ;;  %726 = vset.pattern.permute.xlu2 %v788_v18  ;;  %v852_v22 = vld [vmem:[%s1135_s3] sm:$0x1]  ;;  %vm51_vm10 = vcmask 7168   ;;  %s867_s2 = sld [smem:[#allocation8]]  ;;  %vm79_vm11 = vcmask 57344   ;;  %v789_v38 = vmov 2  }
   0x9   :  { %v31_v2 = vsel %vm30_vm0, %v29_v1, 0.0  ;;  %v842_v20 = vshrl.u32 %v214_v19, 7  ;;  %v854_v23 = vand.u32 127, %v214_v19  ;;  %s875_s3 = sld [smem:[#allocation8 + $0x2]]  ;;  %729 = vset.pattern.permute.xlu0 %v789_v38  ;;  %v790_v39 = vmov 3   ;;  %s797_s29 = smov [#allocation9]  }
   0xa   :  { %32 = vadd.xlane.f32.xlu0 %v31_v2  ;;  %s878_s24 = sld [smem:[#allocation8 + $0x3]]  ;;  %v791_v59 = vmov 4   ;;  %v792_v60 = vmov 7   ;;  %v793_v61 = vmov 1   ;;  %s679_s30 = sshll.u32 %s797_s29, 4  ;;  %s680_s30 = int_to_ptr.vmem [resolvable:$true] %s679_s30 }
   0xb   :  { %vm279_vm4 = vcmp.ne.s32.totalorder %v842_v20, 1  ;;  %vm219_vm7 = vcmp.lt.s32.totalorder %v854_v23, 8  ;;  %vm225_vm13 = vcmp.ne.s32.totalorder %v842_v20, 0  ;;  %s886_s25 = sld [smem:[#allocation8 + $0x4]]  ;;  %s681_s7 = sshll.u32 %s1136_s4, 4  ;;  %s682_s7 = int_to_ptr.hbm [resolvable:$true] %s681_s7 }
   0xc   :  { %s899_s26 = sld [smem:[#allocation8 + $0x5]] }
   0xd   :  { %v276_v24 = vstv %s699_s0  ;;  %s902_s27 = sld [smem:[#allocation8 + $0x7]] }
   0xe   :  { %vm277_vm5 = vcmp.eq.s32.totalorder %v847_v21, %v276_v24  ;;  %vm286_vm6 = vcmp.ne.s32.totalorder %v852_v22, %v276_v24  ;;  %v222_v30 = vstv %s867_s2  ;;  %s913_s28 = sld [smem:[#allocation8 + $0x6]] }
   0xf   :  { %vm280_vm8 = vmand %vm277_vm5, %vm279_vm4  ;;  %vm223_vm12 = vcmp.eq.s32.totalorder %v847_v21, %v222_v30  ;;  %v328_v32 = vstv %s875_s3 }
  0x10   :  { %vm862_vm9 = vmand %vm286_vm6, %vm219_vm7  ;;  %v296_v26 = vsel %vm280_vm8, 1, %v788_v18  ;;  %vm329_vm15 = vcmp.eq.s32.totalorder %v847_v21, %v328_v32  ;;  %v380_v34 = vstv %s878_s24  ;;  %vm435_vm6 = vcmp.ne.s32.totalorder %v842_v20, 4 }
  0x11   :  { %298 = vperm.xlu2 %726, %v296_v26   ;;  %vm226_vm14 = vmand %vm223_vm12, %vm225_vm13  ;;  %v432_v36 = vstv %s886_s25  ;;  %vm487_vm13 = vcmp.ne.s32.totalorder %v842_v20, 5 }
  0x12   :  { %v243_v31 = vsel %vm226_vm14, 1, %v788_v18  ;;  %vm433_vm5 = vcmp.eq.s32.totalorder %v847_v21, %v432_v36  ;;  %v484_v58 = vstv %s899_s26 }
  0x13   :  { %vm436_vm8 = vmand %vm433_vm5, %vm435_vm6  ;;  %vm485_vm12 = vcmp.eq.s32.totalorder %v847_v21, %v484_v58  ;;  %v588_v62 = vstv %s902_s27  ;;  %vm539_vm5 = vcmp.ne.s32.totalorder %v842_v20, 6 }
  0x14   :  { %v452_v37 = vsel %vm436_vm8, 1, %v788_v18  ;;  %vm488_vm14 = vmand %vm485_vm12, %vm487_vm13  ;;  %v536_v2 = vstv %s913_s28  ;;  %vm390_vm8 = vcmp.ne.s32.totalorder %v852_v22, %v380_v34 }
  0x15   :  { %v504_v63 = vsel %vm488_vm14, 1, %v788_v18  ;;  %vm947_vm12 = vmand %vm390_vm8, %vm219_vm7 }
  0x16   :  { %v406_v1 = vsel %vm947_vm12, 1, %v788_v18 }
  0x7d   :  { %v33_v3 = vpop.xlane.xlu0 %32 }
  0x7e   :  { %v34_v4 = vmax.f32 %v33_v3, 1e-24 }
  0x80   :  { %738 = vrsqrt.f32 %v34_v4  ;;  %vm41_vm2 = vweird.f32 %v34_v4 }
  0x86   :  { %v739_v5 = vpop.eup %738 }
  0x87   :  { %v36_v6 = vmul.f32 %v739_v5, %v34_v4  ;;  %vm42_vm1 = vweird.f32 %v739_v5  ;;  %v795_v4 = vmov 6  }
  0x88   :  { %vm43_vm3 = vmor %vm41_vm2, %vm42_vm1  ;;  %vm381_vm2 = vcmp.eq.s32.totalorder %v847_v21, %v380_v34 }
  0x89   :  { %v37_v7 = vmul.f32 %v739_v5, %v36_v6 }
  0x8b   :  { %v38_v8 = vmul.f32 0.5, %v37_v7 }
  0x8d   :  { %v39_v9 = vsub.f32 1.5, %v38_v8 }
  0x8f   :  { %v40_v10 = vmul.f32 %v739_v5, %v39_v9 }
  0x91   :  { %v44_v11 = vsel %vm43_vm3, %v739_v5, %v40_v10  ;;  %vm383_vm3 = vcmp.ne.s32.totalorder %v842_v20, 3 }
  0x92   :  { %v45_v12 = vmul.f32 %v44_v11, %v28_v0  ;;  %vm384_vm4 = vmand %vm381_vm2, %vm383_vm3  ;;  %v794_v0 = vmov 5  }
  0x93   :  { %v400_v35 = vsel %vm384_vm4, 1, %v788_v18  ;;  %vm537_vm4 = vcmp.eq.s32.totalorder %v847_v21, %v536_v2 }
  0x94   :  { %46 = vst.msk [vmem:[#allocation2] sm:$0xff] %vm30_vm0, %v45_v12  ;;  %v47_v13 = vmul.f32 %v45_v12, %v45_v12  ;;  %vm540_vm6 = vmand %vm537_vm4, %vm539_vm5 }
  0x95   :  { %v556_v5 = vsel %vm540_vm6, 1, %v788_v18  ;;  %vm254_vm6 = vcmask 64512  }
  0x96   :  { %690 = vmatpush.xpose.msk.msra.mxu0 %vm30_vm0, %v47_v13  ;;  %v48_v14 = vsel %vm30_vm0, %v47_v13, 0.0  ;;  %v299_v13 = vpop.permute.xlu2 %298 }
  0x97   :  { %49 = vadd.xlane.f32.xlu0 %v48_v14 }
  0x99   :  { %691 = vmatmul.msk.f32.vlgmr.msra.gmra.mxu0 %vm30_vm0, %v787_v15 }
  0x9b   :  { %v85_v16 = vld [vmem:[#allocation2] sm:$0xff] }
  0x9c   :  { %694 = vmatpush.xpose.msk.msra.mxu2 %vm30_vm0, %v85_v16  ;;  %696 = vmatpush.xpose.msk.msra.mxu3 %vm30_vm0, %v85_v16  ;;  %v92_v17 = vmul.f32 %v85_v16, %v85_v16 }
  0x9e   :  { %692 = vmatpush.xpose.msk.msra.mxu1 %vm30_vm0, %v92_v17 }
  0x9f   :  { %695 = vmatmul.msk.f32.vlgmr.msra.gmra.mxu2 %vm30_vm0, %v85_v16  ;;  %697 = vmatmul.msk.f32.vlgmr.msra.gmra.mxu3 %vm30_vm0, %v85_v16 }
  0xa1   :  { %693 = vmatmul.msk.f32.vlgmr.msra.gmra.mxu1 %vm30_vm0, %v787_v15  ;;  %vm331_vm0 = vcmp.ne.s32.totalorder %v842_v20, 2 }
  0xa2   :  { %vm332_vm1 = vmand %vm329_vm15, %vm331_vm0  ;;  %vm232_vm15 = vcmp.ne.s32.totalorder %v852_v22, %v222_v30  ;;  %vm589_vm0 = vcmp.eq.s32.totalorder %v847_v21, %v588_v62 }
  0xa3   :  { %v348_v33 = vsel %vm332_vm1, 1, %v788_v18  ;;  %vm591_vm1 = vcmp.ne.s32.totalorder %v842_v20, 7  ;;  %vm920_vm2 = vmand %vm232_vm15, %vm219_vm7  ;;  %vm442_vm15 = vcmp.ne.s32.totalorder %v852_v22, %v432_v36  ;;  %v302_v36 = vsel %vm862_vm9, 1, %v788_v18 }
  0xa4   :  { %350 = vperm.xlu2 %726, %v348_v33   ;;  %vm592_vm3 = vmand %vm589_vm0, %vm591_vm1  ;;  %vm598_vm0 = vcmp.ne.s32.totalorder %v852_v22, %v588_v62 }
  0xa5   :  { %v608_v3 = vsel %vm592_vm3, 1, %v788_v18  ;;  %vm969_vm3 = vmand %vm442_vm15, %vm219_vm7 }
  0xa6   :  { %vm975_vm5 = vmand %vm598_vm0, %vm219_vm7 }
  0xac   :  { %402 = vperm.xlu2 %726, %v400_v35  }
  0xb4   :  { %454 = vperm.xlu2 %726, %v452_v37  }
  0xfe   :  { %v933_v16 = vpop.permute.xlu2 %350 }
 0x106   :  { %v935_v20 = vpop.permute.xlu2 %402 }
 0x107   :  { %vm404_vm12 = vcmp.eq.s32.totalorder %v935_v20, 1 }
 0x10a   :  { %v50_v27 = vpop.xlane.xlu0 %49 }
 0x10b   :  { %52 = vst.msk [vmem:[#allocation4] sm:$0xff] %vm51_vm10, %v50_v27 }
 0x10e   :  { %v937_v27 = vpop.permute.xlu2 %454 }
 0x112   :  { %v88_v28 = vld [vmem:[#allocation4] sm:$0xff] }
 0x113   :  { %192 = vperm.xlu1 %725, %v88_v28  }
 0x116   :  { %v76_v29 = vpop.f32.mrf.mxu0 }
 0x117   :  { %80 = vst.msk [vmem:[#allocation3] sm:$0x1] %vm79_vm11, %v76_v29 }
 0x11b   :  { %168 = vperm.xlu1 %725, %v88_v28  }
 0x11e   :  { %v117_v40 = vpop.f32.mrf.mxu1  ;;  %v737_v6 = vld [vmem:[#allocation3] ss:$0 sm:$0xff] }
 0x11f   :  { %v195_v41 = vperm.slane %v117_v40, 0 }
 0x122   :  { %v163_v42 = vpop.f32.mrf.mxu3  ;;  %v143_v8 = vpop.f32.mrf.mxu2 }
 0x123   :  { %245 = vperm.xlu1 %725, %v243_v31   ;;  %v197_v44 = vmul.f32 2.0, %v163_v42  ;;  %v175_v10 = vmul.f32 2.0, %v143_v8 }
 0x12b   :  { %730 = vset.pattern.permute.xlu1 %v790_v39 }
 0x185   :  { %v193_v43 = vpop.permute.xlu1 %192 }
 0x186   :  { %v196_v45 = vadd.f32 %v195_v41, %v193_v43 }
 0x188   :  { %v198_v46 = vsub.f32 %v196_v45, %v197_v44  ;;  %v796_v44 = vmov 0.0  }
 0x18a   :  { %v199_v47 = vmax.f32 %v198_v46, 0.0 }
 0x18c   :  { %740 = vrsqrt.f32 %v199_v47  ;;  %vm207_vm10 = vcmp.eq.f32.partialorder %v199_v47, inf  ;;  %v210_v55 = vand.u32 2147483648, %v199_v47  ;;  %vm209_vm11 = vcmp.eq.f32.partialorder %v199_v47, 0.0 }
 0x18d   :  { %v169_v7 = vpop.permute.xlu1 %168 }
 0x18e   :  { %v174_v9 = vadd.f32 %v737_v6, %v169_v7 }
 0x190   :  { %v176_v11 = vsub.f32 %v174_v9, %v175_v10 }
 0x192   :  { %v741_v48 = vpop.eup %740  ;;  %v177_v12 = vmax.f32 %v176_v11, 0.0 }
 0x193   :  { %v201_v49 = vmul.f32 %v741_v48, %v199_v47 }
 0x194   :  { %742 = vrsqrt.f32 %v177_v12  ;;  %v188_v29 = vand.u32 2147483648, %v177_v12  ;;  %vm187_vm13 = vcmp.eq.f32.partialorder %v177_v12, 0.0 }
 0x195   :  { %v202_v50 = vmul.f32 %v741_v48, %v201_v49  ;;  %v246_v39 = vpop.permute.xlu1 %245  ;;  %v303_v49 = vperm.slane %v302_v36, 0 }
 0x197   :  { %v203_v51 = vmul.f32 0.5, %v202_v50  ;;  %vm304_vm9 = vcmp.eq.s32.totalorder %v303_v49, 1 }
 0x199   :  { %v204_v52 = vsub.f32 1.5, %v203_v51 }
 0x19a   :  { %v743_v14 = vpop.eup %742 }
 0x19b   :  { %v205_v53 = vmul.f32 %v741_v48, %v204_v52  ;;  %v179_v15 = vmul.f32 %v743_v14, %v177_v12 }
 0x19d   :  { %v206_v54 = vmul.f32 %v205_v53, %v199_v47  ;;  %v180_v17 = vmul.f32 %v743_v14, %v179_v15 }
 0x19f   :  { %v208_v56 = vsel %vm207_vm10, %v199_v47, %v206_v54  ;;  %v181_v19 = vmul.f32 0.5, %v180_v17  ;;  %vm338_vm10 = vcmp.ne.s32.totalorder %v852_v22, %v328_v32  ;;  %v249_v32 = vsel %vm920_vm2, 1, %v788_v18 }
 0x1a0   :  { %v211_v57 = vsel %vm209_vm11, %v210_v55, %v208_v56  ;;  %vm185_vm11 = vcmp.eq.f32.partialorder %v177_v12, inf  ;;  %vm953_vm14 = vmand %vm338_vm10, %vm219_vm7  ;;  %v250_v35 = vperm.slane %v249_v32, 0  ;;  %vm247_vm2 = vcmp.eq.s32.totalorder %v246_v39, 1 }
 0x1a1   :  { %393 = vperm.xlu1 %730, %v211_v57   ;;  %341 = vperm.xlu0 %729, %v211_v57   ;;  %v182_v21 = vsub.f32 1.5, %v181_v19 }
 0x1a2   :  { %236 = vperm.xlu2 %726, %v211_v57   ;;  %vm251_vm1 = vcmp.eq.s32.totalorder %v250_v35, 1 }
 0x1a3   :  { %v183_v24 = vmul.f32 %v743_v14, %v182_v21 }
 0x1a5   :  { %v184_v26 = vmul.f32 %v183_v24, %v177_v12 }
 0x1a7   :  { %v186_v28 = vsel %vm185_vm11, %v177_v12, %v184_v26  ;;  %vm494_vm11 = vcmp.ne.s32.totalorder %v852_v22, %v484_v58  ;;  %v407_v12 = vperm.slane %v406_v1, 0 }
 0x1a8   :  { %v957_v33 = vsel %vm187_vm13, %v188_v29, %v186_v28  ;;  %vm300_vm13 = vcmp.eq.s32.totalorder %v299_v13, 1 }
 0x1a9   :  { %731 = vset.pattern.permute.xlu1 %v791_v59  ;;  %734 = vset.pattern.permute.xlu0 %v792_v60  ;;  %v239_v34 = vperm.slane %v957_v33, 0  ;;  %v292_v46 = vperm.slane %v957_v33, 1  ;;  %v396_v8 = vperm.slane %v957_v33, 3  ;;  %v344_v9 = vperm.slane %v957_v33, 2 }
 0x1aa   :  { %727 = vset.pattern.permute.xlu2 %v793_v61  ;;  %445 = vperm.xlu1 %731, %v211_v57   ;;  %v604_v41 = vperm.slane %v957_v33, 7 }
 0x1ab   :  { %601 = vperm.xlu0 %734, %v211_v57   ;;  %289 = vperm.xlu2 %727, %v211_v57  }
 0x1b2   :  { %732 = vset.pattern.permute.xlu1 %v794_v0 }
 0x1b3   :  { %497 = vperm.xlu1 %732, %v211_v57   ;;  %728 = vset.pattern.permute.xlu2 %v788_v18 }
 0x1b4   :  { %506 = vperm.xlu2 %728, %v504_v63   ;;  %736 = vset.pattern.permute.xlu0 %v788_v18 }
 0x1bb   :  { %733 = vset.pattern.permute.xlu1 %v795_v4 }
 0x1bc   :  { %549 = vperm.xlu1 %733, %v211_v57   ;;  %610 = vperm.xlu2 %728, %v608_v3   ;;  %v354_v3 = vsel %vm953_vm14, 1, %v788_v18  ;;  %vm1007_vm14 = vcmp.eq.s32.totalorder %v407_v12, 1 }
 0x1bd   :  { %v355_v17 = vperm.slane %v354_v3, 0 }
 0x1c4   :  { %735 = vset.pattern.permute.xlu1 %v788_v18 }
 0x1c5   :  { %558 = vperm.xlu1 %735, %v556_v5  }
 0x1fc   :  { %v237_v37 = vpop.permute.xlu2 %236 }
 0x1fd   :  { %v240_v38 = vsub.f32 %v237_v37, %v239_v34 }
 0x1ff   :  { %v241_v40 = vadd.f32 0.2, %v240_v38  ;;  %v458_v38 = vsel %vm969_vm3, 1, %v788_v18 }
 0x201   :  { %vm242_vm4 = vcmp.gt.f32.partialorder %v241_v40, 0.0 }
 0x202   :  { %vm248_vm8 = vmand %vm242_vm4, %vm247_vm2 }
 0x203   :  { %vm252_vm10 = vmand %vm248_vm8, %vm251_vm1  ;;  %vm1013_vm8 = vcmp.eq.s32.totalorder %v355_v17, 1 }
 0x204   :  { %v253_v43 = vsel %vm252_vm10, %v241_v40, 0.0  ;;  %v698_v45 = vsel %vm252_vm10, 1.0, %v796_v44  ;;  %vm992_vm2 = vmand %vm494_vm11, %vm219_vm7  ;;  %vm1023_vm11 = vcmp.ne.s32.totalorder %v852_v22, %v536_v2 }
 0x205   :  { %v255_v47 = vsel %vm254_vm6, %v253_v43, 0.0  ;;  %v265_v48 = vsel %vm254_vm6, %v698_v45, 0.0  ;;  %v290_v50 = vpop.permute.xlu2 %289  ;;  %v448_v45 = vperm.slane %v957_v33, 4 }
 0x206   :  { %v256_v51 = vrot.slane %v255_v47, 4  ;;  %v266_v52 = vrot.slane %v265_v48, 4  ;;  %v293_v53 = vsub.f32 %v290_v50, %v292_v46 }
 0x208   :  { %v294_v54 = vadd.f32 0.2, %v293_v53  ;;  %v257_v25 = vadd.f32 %v256_v51, %v255_v47  ;;  %v267_v55 = vadd.f32 %v266_v52, %v265_v48  ;;  %v614_v51 = vsel %vm975_vm5, 1, %v788_v18 }
 0x20a   :  { %vm295_vm15 = vcmp.gt.f32.partialorder %v294_v54, 0.0  ;;  %v258_v56 = vrot.slane %v257_v25, 2  ;;  %v268_v57 = vrot.slane %v267_v55, 2 }
 0x20b   :  { %vm301_vm0 = vmand %vm295_vm15, %vm300_vm13  ;;  %vm352_vm13 = vcmp.eq.s32.totalorder %v933_v16, 1  ;;  %v459_v16 = vperm.slane %v458_v38, 0 }
 0x20c   :  { %vm305_vm1 = vmand %vm301_vm0, %vm304_vm9  ;;  %v259_v4 = vadd.f32 %v258_v56, %v257_v25  ;;  %v269_v5 = vadd.f32 %v268_v57, %v267_v55 }
 0x20d   :  { %v306_v59 = vsel %vm305_vm1, %v294_v54, 0.0  ;;  %v700_v60 = vsel %vm305_vm1, 1.0, %v796_v44  ;;  %vm1050_vm1 = vmand %vm1023_vm11, %vm219_vm7  ;;  %vm1056_vm5 = vcmp.eq.s32.totalorder %v459_v16, 1  ;;  %vm456_vm7 = vcmp.eq.s32.totalorder %v937_v27, 1 }
 0x20e   :  { %v307_v62 = vsel %vm254_vm6, %v306_v59, 0.0  ;;  %v317_v63 = vsel %vm254_vm6, %v700_v60, 0.0  ;;  %v260_v21 = vrot.slane %v259_v4, 1  ;;  %v270_v24 = vrot.slane %v269_v5, 1  ;;  %v1011_v35 = vpop.permute.xlu2 %506 }
 0x20f   :  { %v308_v58 = vrot.slane %v307_v62, 4  ;;  %v318_v0 = vrot.slane %v317_v63, 4  ;;  %vm508_vm11 = vcmp.eq.s32.totalorder %v1011_v35, 1 }
 0x210   :  { %v261_v39 = vadd.f32 %v260_v21, %v259_v4  ;;  %v271_v20 = vadd.f32 %v270_v24, %v269_v5 }
 0x211   :  { %v309_v6 = vadd.f32 %v308_v58, %v307_v62  ;;  %v319_v7 = vadd.f32 %v318_v0, %v317_v63 }
 0x213   :  { %v310_v10 = vrot.slane %v309_v6, 2  ;;  %v320_v11 = vrot.slane %v319_v7, 2  ;;  %v394_v13 = vpop.permute.xlu1 %393  ;;  %v342_v14 = vpop.permute.xlu0 %341 }
 0x214   :  { %v397_v15 = vsub.f32 %v394_v13, %v396_v8  ;;  %v345_v19 = vsub.f32 %v342_v14, %v344_v9  ;;  %v615_v9 = vperm.slane %v614_v51, 0  ;;  %v510_v13 = vsel %vm992_vm2, 1, %v788_v18 }
 0x215   :  { %v311_v26 = vadd.f32 %v310_v10, %v309_v6  ;;  %v321_v28 = vadd.f32 %v320_v11, %v319_v7 }
 0x216   :  { %v398_v29 = vadd.f32 0.2, %v397_v15  ;;  %v346_v30 = vadd.f32 0.2, %v345_v19  ;;  %v611_v8 = vpop.permute.xlu2 %610  ;;  %v500_v15 = vperm.slane %v957_v33, 5  ;;  %vm1068_vm2 = vcmp.eq.s32.totalorder %v615_v9, 1 }
 0x217   :  { %v312_v31 = vrot.slane %v311_v26, 1  ;;  %v322_v32 = vrot.slane %v321_v28, 1 }
 0x218   :  { %vm399_vm4 = vcmp.gt.f32.partialorder %v398_v29, 0.0  ;;  %vm347_vm10 = vcmp.gt.f32.partialorder %v346_v30, 0.0 }
 0x219   :  { %v313_v40 = vadd.f32 %v312_v31, %v311_v26  ;;  %v323_v36 = vadd.f32 %v322_v32, %v321_v28  ;;  %vm405_vm9 = vmand %vm399_vm4, %vm404_vm12  ;;  %v511_v26 = vperm.slane %v510_v13, 0 }
 0x21a   :  { %vm409_vm15 = vmand %vm405_vm9, %vm1007_vm14 }
 0x21b   :  { %v1032_v46 = vadd.f32 %v313_v40, %v261_v39  ;;  %v1034_v47 = vadd.f32 %v323_v36, %v271_v20  ;;  %v410_v48 = vsel %vm409_vm15, %v398_v29, 0.0  ;;  %v704_v49 = vsel %vm409_vm15, 1.0, %v796_v44  ;;  %vm353_vm3 = vmand %vm347_vm10, %vm352_vm13 }
 0x21c   :  { %v411_v22 = vsel %vm254_vm6, %v410_v48, 0.0  ;;  %v421_v2 = vsel %vm254_vm6, %v704_v49, 0.0  ;;  %vm357_vm0 = vmand %vm353_vm3, %vm1013_vm8  ;;  %v446_v50 = vpop.permute.xlu1 %445  ;;  %vm612_vm10 = vcmp.eq.s32.totalorder %v611_v8, 1  ;;  %vm1083_vm15 = vcmp.eq.s32.totalorder %v511_v26, 1 }
 0x21d   :  { %v412_v52 = vrot.slane %v411_v22, 4  ;;  %v422_v53 = vrot.slane %v421_v2, 4  ;;  %v358_v54 = vsel %vm357_vm0, %v346_v30, 0.0  ;;  %v702_v25 = vsel %vm357_vm0, 1.0, %v796_v44  ;;  %v602_v55 = vpop.permute.xlu0 %601 }
 0x21e   :  { %v359_v57 = vsel %vm254_vm6, %v358_v54, 0.0  ;;  %v369_v59 = vsel %vm254_vm6, %v702_v25, 0.0  ;;  %v449_v42 = vsub.f32 %v446_v50, %v448_v45  ;;  %v605_v60 = vsub.f32 %v602_v55, %v604_v41 }
 0x21f   :  { %v413_v62 = vadd.f32 %v412_v52, %v411_v22  ;;  %v423_v63 = vadd.f32 %v422_v53, %v421_v2  ;;  %v360_v58 = vrot.slane %v359_v57, 4  ;;  %v370_v0 = vrot.slane %v369_v59, 4 }
 0x220   :  { %v450_v23 = vadd.f32 0.2, %v449_v42  ;;  %v606_v3 = vadd.f32 0.2, %v605_v60  ;;  %v562_v54 = vsel %vm1050_vm1, 1, %v788_v18 }
 0x221   :  { %v414_v4 = vrot.slane %v413_v62, 2  ;;  %v424_v5 = vrot.slane %v423_v63, 2  ;;  %v361_v6 = vadd.f32 %v360_v58, %v359_v57  ;;  %v371_v7 = vadd.f32 %v370_v0, %v369_v59 }
 0x222   :  { %vm451_vm12 = vcmp.gt.f32.partialorder %v450_v23, 0.0  ;;  %vm607_vm8 = vcmp.gt.f32.partialorder %v606_v3, 0.0 }
 0x223   :  { %v415_v10 = vadd.f32 %v414_v4, %v413_v62  ;;  %v362_v11 = vrot.slane %v361_v6, 2  ;;  %v372_v12 = vrot.slane %v371_v7, 2  ;;  %vm457_vm14 = vmand %vm451_vm12, %vm456_vm7  ;;  %v425_v14 = vadd.f32 %v424_v5, %v423_v63 }
 0x224   :  { %vm461_vm4 = vmand %vm457_vm14, %vm1056_vm5  ;;  %vm81_vm7 = vcmask 0   ;;  %v563_v5 = vperm.slane %v562_v54, 0 }
 0x225   :  { %v363_v17 = vadd.f32 %v362_v11, %v361_v6  ;;  %v373_v27 = vadd.f32 %v372_v12, %v371_v7  ;;  %v498_v19 = vpop.permute.xlu1 %497  ;;  %v462_v21 = vsel %vm461_vm4, %v450_v23, 0.0  ;;  %v706_v24 = vsel %vm461_vm4, 1.0, %v796_v44  ;;  %vm1072_vm9 = vmand %vm607_vm8, %vm612_vm10  ;;  %83 = vst.msk [vmem:[#allocation6] sm:$0x1] %vm81_vm7, %v796_v44 }
 0x226   :  { %v501_v28 = vsub.f32 %v498_v19, %v500_v15  ;;  %v416_v29 = vrot.slane %v415_v10, 1  ;;  %v426_v34 = vrot.slane %v425_v14, 1  ;;  %v463_v37 = vsel %vm254_vm6, %v462_v21, 0.0  ;;  %vm617_vm13 = vmand %vm1072_vm9, %vm1068_vm2  ;;  %82 = vst.msk [vmem:[#allocation5] sm:$0x1] %vm81_vm7, %v796_v44 }
 0x227   :  { %v364_v30 = vrot.slane %v363_v17, 1  ;;  %v374_v61 = vrot.slane %v373_v27, 1  ;;  %v473_v38 = vsel %vm254_vm6, %v706_v24, 0.0  ;;  %v464_v40 = vrot.slane %v463_v37, 4 }
 0x228   :  { %v474_v36 = vrot.slane %v473_v38, 4  ;;  %v502_v45 = vadd.f32 0.2, %v501_v28  ;;  %v417_v41 = vadd.f32 %v416_v29, %v415_v10  ;;  %v427_v2 = vadd.f32 %v426_v34, %v425_v14 }
 0x229   :  { %v365_v39 = vadd.f32 %v364_v30, %v363_v17  ;;  %v375_v20 = vadd.f32 %v374_v61, %v373_v27  ;;  %v465_v49 = vadd.f32 %v464_v40, %v463_v37  ;;  %v618_v51 = vsel %vm617_vm13, %v606_v3, 0.0 }
 0x22a   :  { %v475_v22 = vadd.f32 %v474_v36, %v473_v38  ;;  %vm503_vm3 = vcmp.gt.f32.partialorder %v502_v45, 0.0  ;;  %v712_v59 = vsel %vm617_vm13, 1.0, %v796_v44  ;;  %vm564_vm1 = vcmp.eq.s32.totalorder %v563_v5, 1 }
 0x22b   :  { %v366_v48 = vadd.f32 %v365_v39, %v1032_v46  ;;  %v376_v16 = vadd.f32 %v375_v20, %v1034_v47  ;;  %v466_v35 = vrot.slane %v465_v49, 2  ;;  %vm1094_vm0 = vmand %vm503_vm3, %vm508_vm11  ;;  %v552_v47 = vperm.slane %v957_v33, 6 }
 0x22c   :  { %v476_v50 = vrot.slane %v475_v22, 2  ;;  %vm513_vm5 = vmand %vm1094_vm0, %vm1083_vm15  ;;  %v619_v33 = vsel %vm254_vm6, %v618_v51, 0.0  ;;  %v629_v1 = vsel %vm254_vm6, %v712_v59, 0.0 }
 0x22d   :  { %v418_v53 = vadd.f32 %v417_v41, %v366_v48  ;;  %v428_v25 = vadd.f32 %v427_v2, %v376_v16  ;;  %v467_v55 = vadd.f32 %v466_v35, %v465_v49  ;;  %v514_v42 = vsel %vm513_vm5, %v502_v45, 0.0 }
 0x22e   :  { %v550_v46 = vpop.permute.xlu1 %549  ;;  %v477_v57 = vadd.f32 %v476_v50, %v475_v22  ;;  %v515_v56 = vsel %vm254_vm6, %v514_v42, 0.0  ;;  %v708_v18 = vsel %vm513_vm5, 1.0, %v796_v44  ;;  %v620_v7 = vrot.slane %v619_v33, 4  ;;  %v644_v42 = vld [vmem:[#allocation6] sm:$0x1] }
 0x22f   :  { %v553_v60 = vsub.f32 %v550_v46, %v552_v47  ;;  %v468_v62 = vrot.slane %v467_v55, 1  ;;  %v516_v58 = vrot.slane %v515_v56, 4  ;;  %v525_v0 = vsel %vm254_vm6, %v708_v18, 0.0 }
 0x230   :  { %v478_v63 = vrot.slane %v477_v57, 1  ;;  %v526_v23 = vrot.slane %v525_v0, 4  ;;  %v630_v10 = vrot.slane %v629_v1, 4  ;;  %v621_v27 = vadd.f32 %v620_v7, %v619_v33  ;;  %v637_v33 = vld [vmem:[#allocation5] sm:$0x1] }
 0x231   :  { %v469_v3 = vadd.f32 %v468_v62, %v467_v55  ;;  %v517_v4 = vadd.f32 %v516_v58, %v515_v56  ;;  %v554_v9 = vadd.f32 0.2, %v553_v60 }
 0x232   :  { %v479_v6 = vadd.f32 %v478_v63, %v477_v57  ;;  %v527_v8 = vadd.f32 %v526_v23, %v525_v0  ;;  %v631_v21 = vadd.f32 %v630_v10, %v629_v1  ;;  %v622_v61 = vrot.slane %v621_v27, 2 }
 0x233   :  { %v518_v11 = vrot.slane %v517_v4, 2  ;;  %v470_v13 = vadd.f32 %v469_v3, %v418_v53  ;;  %vm555_vm12 = vcmp.gt.f32.partialorder %v554_v9, 0.0 }
 0x234   :  { %v480_v12 = vadd.f32 %v479_v6, %v428_v25  ;;  %v528_v14 = vrot.slane %v527_v8, 2  ;;  %v632_v37 = vrot.slane %v631_v21, 2  ;;  %v623_v49 = vadd.f32 %v622_v61, %v621_v27 }
 0x235   :  { %v519_v15 = vadd.f32 %v518_v11, %v517_v4 }
 0x236   :  { %v529_v19 = vadd.f32 %v528_v14, %v527_v8  ;;  %v633_v48 = vadd.f32 %v632_v37, %v631_v21  ;;  %v624_v50 = vrot.slane %v623_v49, 1 }
 0x237   :  { %v559_v17 = vpop.permute.xlu1 %558  ;;  %v520_v24 = vrot.slane %v519_v15, 1 }
 0x238   :  { %vm560_vm14 = vcmp.eq.s32.totalorder %v559_v17, 1  ;;  %v530_v26 = vrot.slane %v529_v19, 1  ;;  %v634_v16 = vrot.slane %v633_v48, 1  ;;  %v625_v54 = vadd.f32 %v624_v50, %v623_v49 }
 0x239   :  { %vm561_vm4 = vmand %vm555_vm12, %vm560_vm14  ;;  %v521_v30 = vadd.f32 %v520_v24, %v519_v15 }
 0x23a   :  { %vm565_vm8 = vmand %vm561_vm4, %vm564_vm1  ;;  %v531_v34 = vadd.f32 %v530_v26, %v529_v19  ;;  %v635_v46 = vadd.f32 %v634_v16, %v633_v48 }
 0x23b   :  { %v566_v28 = vsel %vm565_vm8, %v554_v9, 0.0  ;;  %v710_v29 = vsel %vm565_vm8, 1.0, %v796_v44  ;;  %v522_v20 = vadd.f32 %v521_v30, %v470_v13 }
 0x23c   :  { %v567_v31 = vsel %vm254_vm6, %v566_v28, 0.0  ;;  %v577_v32 = vsel %vm254_vm6, %v710_v29, 0.0  ;;  %v532_v40 = vadd.f32 %v531_v34, %v480_v12 }
 0x23d   :  { %v568_v38 = vrot.slane %v567_v31, 4  ;;  %v578_v39 = vrot.slane %v577_v32, 4 }
 0x23f   :  { %v569_v36 = vadd.f32 %v568_v38, %v567_v31  ;;  %v579_v43 = vadd.f32 %v578_v39, %v577_v32 }
 0x241   :  { %v570_v45 = vrot.slane %v569_v36, 2  ;;  %v580_v41 = vrot.slane %v579_v43, 2 }
 0x243   :  { %v571_v22 = vadd.f32 %v570_v45, %v569_v36  ;;  %v581_v44 = vadd.f32 %v580_v41, %v579_v43 }
 0x245   :  { %v582_v2 = vrot.slane %v581_v44, 1  ;;  %v572_v35 = vrot.slane %v571_v22, 1 }
 0x247   :  { %v583_v51 = vadd.f32 %v582_v2, %v581_v44  ;;  %v573_v52 = vadd.f32 %v572_v35, %v571_v22 }
 0x249   :  { %v584_v53 = vadd.f32 %v583_v51, %v532_v40  ;;  %v574_v47 = vadd.f32 %v573_v52, %v522_v20 }
 0x24b   :  { %v636_v25 = vadd.f32 %v635_v46, %v584_v53  ;;  %v626_v55 = vadd.f32 %v625_v54, %v574_v47 }
 0x24d   :  { %v645_v57 = vsel %vm254_vm6, %v636_v25, 0.0  ;;  %v638_v59 = vsel %vm254_vm6, %v626_v55, 0.0 }
 0x24e   :  { %646 = vadd.xlane.f32.xlu1 %v645_v57  ;;  %639 = vadd.xlane.f32.xlu2 %v638_v59 }
 0x2c1   :  { %v647_v56 = vpop.xlane.xlu1 %646  ;;  %v640_v18 = vpop.xlane.xlu2 %639 }
 0x2c2   :  { %v648_v60 = vadd.f32 %v647_v56, %v644_v42  ;;  %v641_v62 = vadd.f32 %v640_v18, %v637_v33 }
 0x2c4   :  { %649 = vst.msk [vmem:[#allocation6] sm:$0x1] %vm81_vm7, %v648_v60 }
 0x2c5   :  { %643 = vst.msk [vmem:[#allocation5] sm:$0x1] %vm81_vm7, %v641_v62 }
 0x2cb   :  { %v654_v63 = vld [vmem:[#allocation6] sm:$0x1] }
 0x2cc   :  { %v656_v58 = vmax.f32 %v654_v63, 1.0  ;;  %v653_v9 = vld [vmem:[#allocation5] sm:$0x1]  ;;  %vm655_vm11 = vcmp.gt.f32.partialorder %v654_v63, 0.0 }
 0x2ce   :  { %744 = vrcp.f32 %v656_v58  ;;  %v668_v3 = vand.u32 2147483648, %v656_v58  ;;  %v666_v5 = vand.u32 2147483647, %v656_v58  ;;  %vm662_vm10 = vweird.f32 %v656_v58 }
 0x2d0   :  { %v669_v7 = vor.u32 1.1754944e-38, %v668_v3  ;;  %vm667_vm9 = vcmp.eq.f32.partialorder %v666_v5, 8.507059e+37 }
 0x2d4   :  { %v745_v0 = vpop.eup %744 }
 0x2d5   :  { %v658_v1 = vmul.f32 %v745_v0, %v656_v58  ;;  %vm663_vm6 = vweird.f32 %v745_v0 }
 0x2d6   :  { %vm664_vm2 = vmor %vm662_vm10, %vm663_vm6 }
 0x2d7   :  { %v659_v23 = vsub.f32 1.0, %v658_v1 }
 0x2d9   :  { %v660_v4 = vmul.f32 %v745_v0, %v659_v23 }
 0x2db   :  { %v661_v6 = vadd.f32 %v745_v0, %v660_v4 }
 0x2dd   :  { %v665_v8 = vsel %vm664_vm2, %v745_v0, %v661_v6 }
 0x2de   :  { %v670_v10 = vsel %vm667_vm9, %v669_v7, %v665_v8 }
 0x2df   :  { %v671_v11 = vmul.f32 %v670_v10, %v653_v9 }
 0x2e1   :  { %v672_v12 = vsel %vm655_vm11, %v671_v11, 0.0 }
 0x2e2   :  { %673 = vst.msk [vmem:[#allocation9] sm:$0x1] %vm81_vm7, %v672_v12 }
 0x2e3   :  { %684 = dma.vmem_to_hbm [thread:$0]  %s680_s30, 16, %s682_s7, [#allocation10]  }
 0x2e4   :  { %784 = dma.done.wait [#allocation10], 16  }
 0x2e5   :  { %785 = vsyncadd [#allocation10], 4294967280 }
 0x2e6   :  { %689 = vsyncpa [#allocation10], 1 }

</bundles_post_ra>
